<compile_context>
chip_gen: v7x
topology: tpu7x:2x2x1
jax: 0.10.0
libtpu: 0.0.40
codegen_flags: <defaults>
</compile_context>

<pallas_src>
import functools

import jax
import jax.numpy as jnp
from jax.experimental import pallas as pl
from jax.experimental.pallas import tpu as pltpu

LANE = 128
SUBLANE = 8


def _round_up(x, m):
    return ((x + m - 1) // m) * m


def _cdiv(a, b):
    return -(-a // b)


def _focal_terms(x, t, gamma):
    """Per-element (1 - pt)**gamma * bce (alpha is applied by the caller)."""
    x = x.astype(jnp.float32)
    t = t.astype(jnp.float32)
    # Numerically stable BCEWithLogits (matches torch.nn.BCEWithLogitsLoss):
    #   bce = max(x, 0) - x*t + log1p(exp(-|x|))
    bce = jnp.maximum(x, 0.0) - x * t + jnp.log1p(jnp.exp(-jnp.abs(x)))
    pt = jnp.exp(-bce)
    one_m_pt = 1.0 - pt

    g = float(gamma)
    if g == 2.0:
        mod = one_m_pt * one_m_pt                     # fast path: no pow
    elif g.is_integer() and g >= 0.0:
        gi = int(g)
        if gi == 0:
            mod = jnp.ones_like(one_m_pt)
        else:
            mod = one_m_pt
            for _ in range(gi - 1):
                mod = mod * one_m_pt
    else:
        # Clamp: numerical noise could push pt marginally above 1; a negative
        # base with a fractional exponent would produce NaN.
        mod = jnp.maximum(one_m_pt, 0.0) ** jnp.float32(g)
    return mod * bce


def _focal_kernel(x_ref, t_ref, out_ref, *, gamma, tile_rows, steps,
                  num_slices, valid_rows_last, mask_last):
    k = pl.program_id(1)

    @pl.when(k == 0)
    def _():
        out_ref[...] = jnp.zeros_like(out_ref)

    f = _focal_terms(x_ref[...], t_ref[...], gamma)

    def fold(v):
        # Pure-VPU fold of the (tile_rows, 128) tile into the (8, 128)
        # resident output block (no cross-lane XLU reduce in the hot loop).
        return v.reshape(tile_rows // SUBLANE, SUBLANE, LANE).sum(axis=0)

    if mask_last:
        # Only the very last grid block over-runs the array; every other
        # block accumulates unmasked, so the mask cost is paid exactly once.
        s = pl.program_id(0)
        is_last = jnp.logical_and(s == num_slices - 1, k == steps - 1)

        @pl.when(is_last)
        def _():
            row_ids = jax.lax.broadcasted_iota(jnp.int32, (tile_rows, LANE), 0)
            out_ref[...] += fold(jnp.where(row_ids < valid_rows_last, f, 0.0))

        @pl.when(jnp.logical_not(is_last))
        def _():
            out_ref[...] += fold(f)
    else:
        out_ref[...] += fold(f)


def _plan(rows, max_tile_rows):
    """Choose (num_slices, steps, tile_rows, valid_rows_last) such that
    num_slices*steps blocks of tile_rows rows cover `rows`, with at most the
    final block over-running the array (and only by a few rows)."""
    est_tile = min(_round_up(max(max_tile_rows, SUBLANE), SUBLANE),
                   _round_up(rows, SUBLANE))
    num_blocks = max(1, _cdiv(rows, est_tile))
    num_slices = 2 if (num_blocks >= 2 and rows >= 2 * SUBLANE) else 1
    num_blocks = _round_up(num_blocks, num_slices)
    # Rebalance: over-run capped at < 8 rows per block boundary.
    tile_rows = _round_up(_cdiv(rows, num_blocks), SUBLANE)
    # Guarantee the final block's start is inside the array.
    while num_blocks > num_slices and (num_blocks - 1) * tile_rows >= rows:
        num_blocks -= num_slices
        tile_rows = _round_up(_cdiv(rows, num_blocks), SUBLANE)
    if (num_blocks - 1) * tile_rows >= rows:
        num_slices, num_blocks = 1, 1
        tile_rows = _round_up(rows, SUBLANE)
    steps = num_blocks // num_slices
    valid_rows_last = rows - (num_blocks - 1) * tile_rows
    return num_slices, steps, tile_rows, valid_rows_last


def focal_loss(inputs, targets, alpha=0.25, gamma=2.0, max_tile_rows=4096):
    """Focal loss (logits=True, reduce=True). Returns a scalar f32.

    Inputs may be any float dtype (bf16 welcome: the kernel upcasts
    in-register, so do NOT pre-cast to f32 — halving HBM bytes is a near-2x
    win on HBM-bound v5e/v6e).  On v7x, max_tile_rows=8192 is also fine.
    """
    assert inputs.shape == targets.shape
    n_total = int(inputs.size)

    x = inputs.reshape(-1)
    t = targets.reshape(-1)

    rows = n_total // LANE
    rem = n_total - rows * LANE

    total = jnp.float32(0.0)

    if rows > 0:
        num_slices, steps, tile_rows, valid_rows_last = _plan(rows,
                                                              max_tile_rows)
        mask_last = valid_rows_last != tile_rows

        main_n = rows * LANE
        x2 = (x if rem == 0 else x[:main_n]).reshape(rows, LANE)
        t2 = (t if rem == 0 else t[:main_n]).reshape(rows, LANE)

        kernel = functools.partial(
            _focal_kernel, gamma=float(gamma), tile_rows=tile_rows,
            steps=steps, num_slices=num_slices,
            valid_rows_last=valid_rows_last, mask_last=mask_last)

        partials = pl.pallas_call(
            kernel,
            out_shape=jax.ShapeDtypeStruct((num_slices * SUBLANE, LANE),
                                           jnp.float32),
            grid_spec=pltpu.PrefetchScalarGridSpec(
                num_scalar_prefetch=0,
                grid=(num_slices, steps),
                in_specs=[
                    pl.BlockSpec((tile_rows, LANE),
                                 lambda s, k: (s * steps + k, 0)),
                    pl.BlockSpec((tile_rows, LANE),
                                 lambda s, k: (s * steps + k, 0)),
                ],
                out_specs=pl.BlockSpec((SUBLANE, LANE), lambda s, k: (s, 0)),
            ),
            compiler_params=pltpu.CompilerParams(
                dimension_semantics=("parallel", "arbitrary"),
                vmem_limit_bytes=32 * 1024 * 1024,
            ),
        )(x2, t2)
        total = total + jnp.sum(partials)

    if rem > 0:
        # <128 ragged lane-tail elements: cheaper to let XLA sum them than to
        # pad (padding would re-stream both full inputs through HBM).
        total = total + jnp.sum(
            _focal_terms(x[rows * LANE:], t[rows * LANE:], gamma))

    # alpha hoisted out of the kernel: one scalar multiply here.
    return jnp.float32(alpha) * total / jnp.float32(n_total)


def focal_loss_ref(inputs, targets, alpha=0.25, gamma=2.0):
    x = inputs.astype(jnp.float32)
    t = targets.astype(jnp.float32)
    bce = jnp.maximum(x, 0.0) - x * t + jnp.log1p(jnp.exp(-jnp.abs(x)))
    pt = jnp.exp(-bce)
    return jnp.mean(alpha * (1.0 - pt) ** gamma * bce)


if __name__ == "__main__":
    key = jax.random.PRNGKey(0)
    k1, k2 = jax.random.split(key)

    # NCHW shape consistent with the PyTorch module (n % 128 == 0: zero-copy).
    B, C, H, W = 2, 4, 16, 16
    logits = jax.random.normal(k1, (B, C, H, W), dtype=jnp.float32)
    targets = (jax.random.uniform(k2, (B, C, H, W)) > 0.5).astype(jnp.float32)

    loss = jax.block_until_ready(focal_loss(logits, targets, 0.25, 2.0))
    ref = focal_loss_ref(logits, targets, 0.25, 2.0)
    assert jnp.allclose(loss, ref, rtol=1e-5, atol=1e-6), (loss, ref)

    # Ragged size: exercises the edge-block mask + the XLA lane-tail path.
    n_odd = 5000  # 39 full rows + 8 tail elements
    x_odd = jax.random.normal(k1, (n_odd,), dtype=jnp.float32)
    t_odd = (jax.random.uniform(k2, (n_odd,)) > 0.5).astype(jnp.float32)
    loss_odd = jax.block_until_ready(focal_loss(x_odd, t_odd))
    ref_odd = focal_loss_ref(x_odd, t_odd)
    assert jnp.allclose(loss_odd, ref_odd, rtol=1e-5, atol=1e-6), (loss_odd,
                                                                   ref_odd)

    # Larger case: exercises num_slices=2 and multi-step accumulation.
    B2, C2, H2, W2 = 2, 3, 512, 512
    k3, k4 = jax.random.split(k2)
    logits_big = jax.random.normal(k3, (B2, C2, H2, W2), dtype=jnp.float32)
    targets_big = (jax.random.uniform(k4, (B2, C2, H2, W2)) > 0.5).astype(
        jnp.float32)
    loss_big = jax.block_until_ready(focal_loss(logits_big, targets_big))
    ref_big = focal_loss_ref(logits_big, targets_big)
    assert jnp.allclose(loss_big, ref_big, rtol=1e-4, atol=1e-6), (loss_big,
                                                                   ref_big)

    print("KERNEL_OK")
</pallas_src>

<mosaic_0001>
module attributes {stable_mosaic.version = 11 : i64} {
  func.func @_focal_kernel(%arg0: i32, %arg1: i32, %arg2: memref<16x128xf32, #tpu.memory_space<vmem>>, %arg3: memref<16x128xf32, #tpu.memory_space<vmem>>, %arg4: memref<8x128xf32, #tpu.memory_space<vmem>>) attributes {dimension_semantics = [#tpu.dimension_semantics<parallel>, #tpu.dimension_semantics<arbitrary>], iteration_bounds = array<i64: 1, 1>, scalar_prefetch = 0 : i64, scratch_operands = 0 : i64, tpu.core_type = #tpu.core_type<tc>, window_params = [{transform_indices = @transform_0, window_bounds = array<i64: 16, 128>}, {transform_indices = @transform_1, window_bounds = array<i64: 16, 128>}, {transform_indices = @transform_2, window_bounds = array<i64: 8, 128>}]} {
    %c0_i32 = arith.constant 0 : i32
    %0 = arith.cmpi eq, %arg1, %c0_i32 : i32
    %1 = arith.extui %0 : i1 to i32
    %c0_i32_0 = arith.constant 0 : i32
    %2 = arith.cmpi ne, %1, %c0_i32_0 : i32
    scf.if %2 {
      %cst_12 = arith.constant 0.000000e+00 : f32
      %27 = vector.broadcast %cst_12 : f32 to vector<8x128xf32>
      %c0_13 = arith.constant 0 : index
      %c0_14 = arith.constant 0 : index
      %28 = vector.load %arg4[%c0_13, %c0_14] : memref<8x128xf32, #tpu.memory_space<vmem>>, vector<8x128xf32>
      tpu.vector_store %arg4[%c0_13, %c0_14], %27 {strides = array<i32>} : memref<8x128xf32, #tpu.memory_space<vmem>>, vector<8x128xf32>,
    } else {
    }
    %c0 = arith.constant 0 : index
    %c0_1 = arith.constant 0 : index
    %3 = vector.load %arg2[%c0, %c0_1] : memref<16x128xf32, #tpu.memory_space<vmem>>, vector<16x128xf32>
    %c0_2 = arith.constant 0 : index
    %c0_3 = arith.constant 0 : index
    %4 = vector.load %arg3[%c0_2, %c0_3] : memref<16x128xf32, #tpu.memory_space<vmem>>, vector<16x128xf32>
    %cst = arith.constant 0.000000e+00 : f32
    %5 = vector.broadcast %cst : f32 to vector<16x128xf32>
    %6 = arith.maximumf %3, %5 : vector<16x128xf32>
    %7 = arith.mulf %3, %4 : vector<16x128xf32>
    %8 = arith.subf %6, %7 : vector<16x128xf32>
    %9 = math.absf %3 : vector<16x128xf32>
    %cst_4 = arith.constant 0.000000e+00 : f32
    %10 = vector.broadcast %cst_4 : f32 to vector<16x128xf32>
    %11 = arith.subf %10, %9 : vector<16x128xf32>
    %12 = math.exp %11 : vector<16x128xf32>
    %13 = math.log1p %12 : vector<16x128xf32>
    %14 = arith.addf %8, %13 : vector<16x128xf32>
    %cst_5 = arith.constant 0.000000e+00 : f32
    %15 = vector.broadcast %cst_5 : f32 to vector<16x128xf32>
    %16 = arith.subf %15, %14 : vector<16x128xf32>
    %17 = math.exp %16 : vector<16x128xf32>
    %cst_6 = arith.constant 1.000000e+00 : f32
    %18 = vector.broadcast %cst_6 : f32 to vector<16x128xf32>
    %19 = arith.subf %18, %17 : vector<16x128xf32>
    %20 = arith.mulf %19, %19 : vector<16x128xf32>
    %21 = arith.mulf %20, %14 : vector<16x128xf32>
    %c0_7 = arith.constant 0 : index
    %c0_8 = arith.constant 0 : index
    %22 = vector.load %arg4[%c0_7, %c0_8] : memref<8x128xf32, #tpu.memory_space<vmem>>, vector<8x128xf32>
    %23 = vector.shape_cast %21 : vector<16x128xf32> to vector<2x8x128xf32>
    %cst_9 = arith.constant dense<0.000000e+00> : vector<8x128xf32>
    %24 = vector.multi_reduction <add>, %23, %cst_9 [0] : vector<2x8x128xf32> to vector<8x128xf32>
    %25 = arith.addf %22, %24 : vector<8x128xf32>
    %c0_10 = arith.constant 0 : index
    %c0_11 = arith.constant 0 : index
    %26 = vector.load %arg4[%c0_10, %c0_11] : memref<8x128xf32, #tpu.memory_space<vmem>>, vector<8x128xf32>
    tpu.vector_store %arg4[%c0_10, %c0_11], %25 {strides = array<i32>} : memref<8x128xf32, #tpu.memory_space<vmem>>, vector<8x128xf32>,
    return
  }
  func.func @transform_0(%arg0: i32, %arg1: i32) -> (i32, i32) {
    %c1_i32 = arith.constant 1 : i32
    %0 = arith.muli %arg0, %c1_i32 : i32
    %1 = arith.addi %0, %arg1 : i32
    %c0_i32 = arith.constant 0 : i32
    %c0_i32_0 = arith.constant 0 : i32
    return %1, %c0_i32 : i32, i32
  }
  func.func @transform_1(%arg0: i32, %arg1: i32) -> (i32, i32) {
    %c1_i32 = arith.constant 1 : i32
    %0 = arith.muli %arg0, %c1_i32 : i32
    %1 = arith.addi %0, %arg1 : i32
    %c0_i32 = arith.constant 0 : i32
    %c0_i32_0 = arith.constant 0 : i32
    return %1, %c0_i32 : i32, i32
  }
  func.func @transform_2(%arg0: i32, %arg1: i32) -> (i32, i32) {
    %c0_i32 = arith.constant 0 : i32
    %c0_i32_0 = arith.constant 0 : i32
    return %arg0, %c0_i32 : i32, i32
  }
}

</mosaic_0001>

<bundles_post_ra>
// kernel: tpu_custom_call.1
= control target key start
LH: loop header
LB: loop body
LE: loop exit
PB: predicated region body
PF: predicated region fallthrough
CT: control target
= control target key end

     0   :  { %7 = vsyncpa [#allocation3], 0  ;;  %s273_s0 = inlined_call_operand.hbm [shape: f32[16,128], index: 0, kind: input, shape index: {}]   ;;  %s274_s1 = inlined_call_operand.hbm [shape: f32[16,128], index: 1, kind: input, shape index: {}]   ;;  %s275_s2 = inlined_call_operand.hbm [shape: f32[8,128], index: 2, kind: output, shape index: {}]  }
   0x1   :  { %8 = vsyncpa [#allocation6], 0 }
   0x2   :  { %9 = vsyncpa [#allocation4], 0  ;;  %s217_s9 = smov [#allocation2]   ;;  %s145_s13 = scalar_lea.hbm %s273_s0, 256 }
   0x3   :  { %s19_s10 = sshll.u32 %s217_s9, 4  ;;  %p146_p0 = scmp.ne.s32.totalorder %s273_s0, %s145_s13  ;;  %s20_s10 = int_to_ptr.vmem [resolvable:$true] %s19_s10 }
   0x4   :  { %p149_p1 = scmp.lt.u32.totalorder %s145_s13, %s273_s0 }
   0x6   :  { %p151_p2 = pnand %p149_p1, %p146_p0 }
   0x8   :  { %154 = shalt.err (!%p151_p2)
}
   0x9   :  { %s155_s18 = scalar_lea.vmem %s20_s10, 256  ;;  %p160_p4 = scmp.lt.s32.totalorder %s20_s10, %s20_s10 }
   0xa   :  { %p156_p3 = scmp.ne.s32.totalorder %s20_s10, %s155_s18  ;;  %p161_p5 = scmp.lt.s32.totalorder %s155_s18, %s155_s18 }
   0xc   :  { %p162_p6 = por %p161_p5, %p160_p4 }
   0xe   :  { %p163_p7 = pnand %p162_p6, %p156_p3 }
  0x10   :  { %166 = shalt.err (!%p163_p7)
}
  0x11   :  { %s218_s19 = smov 128   ;;  %s219_s20 = smov 8  }
  0x12   :  { %25 = dma.hbm_to_vmem [thread:$0]  %s273_s0, 256, %s20_s10, [#allocation3], %s218_s19, %s218_s19, %s219_s20  }
  0x13   :  { %s220_s23 = smov [#allocation5]   ;;  %s167_s27 = scalar_lea.hbm %s274_s1, 256 }
  0x14   :  { %s35_s24 = sshll.u32 %s220_s23, 4  ;;  %p168_p8 = scmp.ne.s32.totalorder %s274_s1, %s167_s27  ;;  %s36_s24 = int_to_ptr.vmem [resolvable:$true] %s35_s24 }
  0x15   :  { %p171_p9 = scmp.lt.u32.totalorder %s167_s27, %s274_s1 }
  0x17   :  { %p173_p10 = pnand %p171_p9, %p168_p8 }
  0x19   :  { %176 = shalt.err (!%p173_p10)
}
  0x1a   :  { %s177_s4 = scalar_lea.vmem %s36_s24, 256  ;;  %p182_p12 = scmp.lt.s32.totalorder %s36_s24, %s36_s24 }
  0x1b   :  { %p178_p11 = scmp.ne.s32.totalorder %s36_s24, %s177_s4  ;;  %p183_p13 = scmp.lt.s32.totalorder %s177_s4, %s177_s4 }
  0x1d   :  { %p184_p0 = por %p183_p13, %p182_p12 }
  0x1f   :  { %p185_p1 = pnand %p184_p0, %p178_p11 }
  0x21   :  { %188 = shalt.err (!%p185_p1)
}
  0x22   :  { %41 = dma.hbm_to_vmem [thread:$0]  %s274_s1, 256, %s36_s24, [#allocation6], %s218_s19, %s218_s19, %s219_s20  }
  0x23   :  { %211 = dma.done.wait [#allocation3], 256  }
  0x24   :  { %212 = vsyncadd [#allocation3], 4294967040 }
  0x25   :  { %213 = dma.done.wait [#allocation6], 256  }
  0x26   :  { %214 = vsyncadd [#allocation6], 4294967040  ;;  %v57_v0 = vld [vmem:[#allocation2] sm:$0xff]  ;;  %v58_v1 = vld [vmem:[#allocation2 + $0x8] sm:$0xff]  ;;  %s221_s1 = smov [#allocation7]  }
  0x27   :  { %v67_v2 = vand.u32 2147483647, %v57_v0  ;;  %v68_v3 = vand.u32 2147483647, %v58_v1  ;;  %v59_v14 = vld [vmem:[#allocation5] sm:$0xff]  ;;  %v60_v15 = vld [vmem:[#allocation5 + $0x8] sm:$0xff] }
  0x28   :  { %v61_v17 = vmax.f32 %v57_v0, 0.0  ;;  %v63_v18 = vmul.f32 %v59_v14, %v57_v0  ;;  %v62_v21 = vmax.f32 %v58_v1, 0.0  ;;  %v64_v22 = vmul.f32 %v60_v15, %v58_v1  ;;  %s117_s6 = sshll.u32 %s221_s1, 4  ;;  %s118_s6 = int_to_ptr.vmem [resolvable:$true] %s117_s6 }
  0x29   :  { %v69_v4 = vsub.f32 0.0, %v67_v2  ;;  %v70_v5 = vsub.f32 0.0, %v68_v3  ;;  %s189_s7 = scalar_lea.vmem %s118_s6, 128  ;;  %p194_p3 = scmp.lt.s32.totalorder %s118_s6, %s118_s6 }
  0x2a   :  { %v65_v26 = vsub.f32 %v61_v17, %v63_v18  ;;  %v66_v29 = vsub.f32 %v62_v21, %v64_v22  ;;  %p190_p2 = scmp.ne.s32.totalorder %s118_s6, %s189_s7  ;;  %p195_p4 = scmp.lt.s32.totalorder %s189_s7, %s189_s7 }
  0x2b   :  { %v71_v6 = vmul.f32 1.442695, %v69_v4  ;;  %v73_v7 = vmul.f32 1.442695, %v70_v5 }
  0x2c   :  { %p196_p5 = por %p195_p4, %p194_p3 }
  0x2d   :  { %133 = vpow2.f32 %v71_v6 }
  0x2e   :  { %135 = vpow2.f32 %v73_v7  ;;  %p197_p6 = pnand %p196_p5, %p190_p2 }
  0x37   :  { %v134_v8 = vpop.eup %133 }
  0x38   :  { %v136_v9 = vpop.eup %135  ;;  %v75_v10 = vadd.f32 1.0, %v134_v8  ;;  %v78_v12 = vmul.f32 -0.5, %v134_v8  ;;  %v81_v19 = vand.u32 2147483647, %v134_v8 }
  0x39   :  { %v84_v11 = vadd.f32 1.0, %v136_v9  ;;  %v87_v13 = vmul.f32 -0.5, %v136_v9  ;;  %v90_v23 = vand.u32 2147483647, %v136_v9 }
  0x3a   :  { %137 = vlog2.f32 %v75_v10  ;;  %v79_v16 = vadd.f32 1.0, %v78_v12  ;;  %vm82_vm0 = vcmp.lt.f32.partialorder %v81_v19, 0.0004427343 }
  0x3b   :  { %139 = vlog2.f32 %v84_v11  ;;  %v88_v20 = vadd.f32 1.0, %v87_v13  ;;  %vm91_vm1 = vcmp.lt.f32.partialorder %v90_v23, 0.0004427343 }
  0x3c   :  { %v80_v24 = vmul.f32 %v134_v8, %v79_v16 }
  0x3d   :  { %v89_v27 = vmul.f32 %v136_v9, %v88_v20 }
  0x44   :  { %v138_v25 = vpop.eup %137 }
  0x45   :  { %v140_v28 = vpop.eup %139  ;;  %v77_v30 = vmul.f32 0.6931472, %v138_v25 }
  0x46   :  { %v86_v31 = vmul.f32 0.6931472, %v140_v28 }
  0x47   :  { %v83_v32 = vsel %vm82_vm0, %v80_v24, %v77_v30 }
  0x48   :  { %v92_v33 = vsel %vm91_vm1, %v89_v27, %v86_v31  ;;  %v93_v34 = vadd.f32 %v83_v32, %v65_v26 }
  0x49   :  { %v94_v35 = vadd.f32 %v92_v33, %v66_v29 }
  0x4a   :  { %v95_v36 = vsub.f32 0.0, %v93_v34 }
  0x4b   :  { %v96_v37 = vsub.f32 0.0, %v94_v35 }
  0x4c   :  { %v97_v38 = vmul.f32 1.442695, %v95_v36 }
  0x4d   :  { %v99_v39 = vmul.f32 1.442695, %v96_v37 }
  0x4e   :  { %141 = vpow2.f32 %v97_v38 }
  0x4f   :  { %143 = vpow2.f32 %v99_v39 }
  0x58   :  { %v142_v40 = vpop.eup %141 }
  0x59   :  { %v144_v41 = vpop.eup %143  ;;  %v101_v42 = vsub.f32 1.0, %v142_v40 }
  0x5a   :  { %v102_v43 = vsub.f32 1.0, %v144_v41 }
  0x5b   :  { %v103_v44 = vmul.f32 %v101_v42, %v101_v42 }
  0x5c   :  { %v104_v45 = vmul.f32 %v102_v43, %v102_v43 }
  0x5d   :  { %v105_v46 = vmul.f32 %v103_v44, %v93_v34 }
  0x5e   :  { %v106_v47 = vmul.f32 %v104_v45, %v94_v35 }
  0x60   :  { %v108_v48 = vadd.f32 %v106_v47, %v105_v46 }
  0x62   :  { %110 = vst [vmem:[#allocation7] sm:$0xff] %v108_v48 }
  0x63   :  { %200 = shalt.err (!%p197_p6)
}
  0x64   :  { %s201_s10 = scalar_lea.hbm %s275_s2, 128 }
  0x65   :  { %p202_p7 = scmp.ne.s32.totalorder %s275_s2, %s201_s10  ;;  %p205_p8 = scmp.lt.u32.totalorder %s201_s10, %s275_s2 }
  0x67   :  { %p207_p9 = pnand %p205_p8, %p202_p7 }
  0x69   :  { %210 = shalt.err (!%p207_p9)
}
  0x6a   :  { %120 = dma.vmem_to_hbm [thread:$0]  %s118_s6, 128, %s275_s2, [#allocation4]  }
  0x6b   :  { %215 = dma.done.wait [#allocation4], 128  }
  0x6c   :  { %216 = vsyncadd [#allocation4], 4294967168 }
  0x6d   :  { %124 = vsyncpa [#allocation3], 1 }
  0x6e   :  { %125 = vsyncpa [#allocation6], 1 }
  0x6f   :  { %126 = vsyncpa [#allocation4], 1 }

</bundles_post_ra>
